<compile_context>
chip_gen: v6e
topology: v6e:2x2x1
jax: 0.10.0
libtpu: 0.0.40
codegen_flags: <defaults>
</compile_context>

<pallas_src>
import numpy as np

import jax
import jax.numpy as jnp
from jax import lax
from jax.experimental import pallas as pl
from jax.experimental.pallas import tpu as pltpu


def basic_block_kernel(x_ref, w1_ref, s1_ref, b1_ref, w2_ref, s2_ref, b2_ref,
                       out_ref):
    # x_ref   : (bt, H, W*C)      f32  lane-dense NHWC input (W, C folded into lanes)
    # w*_ref  : (3, W*C, W*C)     bf16 banded conv weights, one band per vertical tap
    # s*/b*   : (1, W*C)          f32  folded BN scale / bias, tiled across W
    # out_ref : (bt, H, W*C)      f32  lane-dense output
    bt, H, WC = x_ref.shape
    M = bt * H
    zrow = jnp.zeros((bt, 1, WC), jnp.float32)

    def banded_conv3x3(act_f32, w_ref):
        # act_f32: (bt, H, WC) f32 activations.  One lane-dense matmul per
        # vertical tap; horizontal taps + W-padding are inside the band weight.
        a = act_f32.astype(jnp.bfloat16).reshape(M, WC)
        y = [jnp.dot(a, w_ref[dy], preferred_element_type=jnp.float32)
                 .reshape(bt, H, WC)
             for dy in range(3)]
        # Vertical (H) halo: out[h] = y0[h-1] + y1[h] + y2[h+1], zero off-image.
        top = jnp.concatenate([zrow, y[0][:, :H - 1, :]], axis=1)
        bot = jnp.concatenate([y[2][:, 1:, :], zrow], axis=1)
        return top + y[1] + bot                        # (bt, H, WC) f32

    x = x_ref[...]                                     # (bt, H, WC) f32

    # ---- conv1 (3x3, pad 1) -> BN1 (eval, folded) -> ReLU ----
    h1 = banded_conv3x3(x, w1_ref)
    h1 = jnp.maximum(h1 * s1_ref[...] + b1_ref[...], 0.0)

    # ---- conv2 (3x3, pad 1) -> BN2 -> + identity residual (no trailing ReLU) ----
    h2 = banded_conv3x3(h1, w2_ref)
    out_ref[...] = h2 * s2_ref[...] + b2_ref[...] + x


def make_banded_weight(w_hwio, W):
    """(3,3,Cin,Cout) HWIO conv weight -> (3, W*Cin, W*Cout) bf16 banded matrices.

    Band dy maps a lane-dense input row (layout w*Cin + ci) to a lane-dense
    output row (layout w*Cout + co) for vertical tap dy; the horizontal taps
    (dx) sit on the +-1 column block-band and pad-columns are simply absent
    (their contribution is zero).
    """
    w = np.asarray(w_hwio, np.float32)
    _, _, cin, cout = w.shape
    band = np.zeros((3, W * cin, W * cout), np.float32)
    for dy in range(3):
        for dx in range(3):
            for j in range(W):                 # output column
                i = j + dx - 1                 # input column (pad = 1)
                if 0 <= i < W:
                    band[dy, i * cin:(i + 1) * cin,
                         j * cout:(j + 1) * cout] = w[dy, dx]
    return jnp.asarray(band, jnp.bfloat16)


def basic_block(x_nchw, w1, s1, b1, w2, s2, b2, *, batch_tile=1):
    """x_nchw: (N, Cin, H, W) f32; w*: HWIO (3,3,Cin,Cout); s*/b*: (Cout,).

    Returns (N, Cout, H, W) f32 (eval-mode BN folded into s*/b*).
    """
    N, Cin, H, W = x_nchw.shape
    Cout = w1.shape[-1]
    assert Cin == Cout, "downsample=None requires in_channels == out_channels"
    bt = batch_tile
    assert N % bt == 0
    WC = W * Cout

    # NCHW -> (N, H, W*C): channels fastest within the lane axis (lane-dense).
    x_flat = (jnp.transpose(x_nchw, (0, 2, 3, 1))
                 .reshape(N, H, W * Cin)
                 .astype(jnp.float32))

    # Banded weights (bf16, MXU operands) + BN scale/bias tiled across W (f32).
    wb1 = make_banded_weight(w1, W)            # (3, W*Cin, W*Cout)
    wb2 = make_banded_weight(w2, W)            # (3, W*Cout, W*Cout)

    def tile_chan(v):
        return jnp.tile(v.astype(jnp.float32).reshape(1, Cout), (1, W))

    s1t, b1t = tile_chan(s1), tile_chan(b1)
    s2t, b2t = tile_chan(s2), tile_chan(b2)

    out_flat = pl.pallas_call(
        basic_block_kernel,
        out_shape=jax.ShapeDtypeStruct((N, H, WC), jnp.float32),
        grid_spec=pltpu.PrefetchScalarGridSpec(
            num_scalar_prefetch=0,
            grid=(N // bt,),
            in_specs=[
                pl.BlockSpec((bt, H, W * Cin), lambda b: (b, 0, 0)),
                pl.BlockSpec((3, W * Cin, WC), lambda b: (0, 0, 0)),
                pl.BlockSpec((1, WC), lambda b: (0, 0)),
                pl.BlockSpec((1, WC), lambda b: (0, 0)),
                pl.BlockSpec((3, WC, WC), lambda b: (0, 0, 0)),
                pl.BlockSpec((1, WC), lambda b: (0, 0)),
                pl.BlockSpec((1, WC), lambda b: (0, 0)),
            ],
            out_specs=pl.BlockSpec((bt, H, WC), lambda b: (b, 0, 0)),
        ),
        # Output blocks are disjoint per step and there is no cross-step scratch
        # state, so the batch axis can run in parallel (v7x dual TensorCore).
        compiler_params=pltpu.CompilerParams(
            dimension_semantics=("parallel",)),
    )(x_flat, wb1, s1t, b1t, wb2, s2t, b2t)

    out = out_flat.reshape(N, H, W, Cout)
    return jnp.transpose(out, (0, 3, 1, 2))


def fold_bn(gamma, beta, mean, var, eps=1e-5):
    scale = gamma / jnp.sqrt(var + eps)
    bias = beta - mean * scale
    return scale, bias


def reference_basic_block(x_nchw, w1, s1, b1, w2, s2, b2):
    """Pure-JAX f32 reference (NHWC conv), for correctness checking."""
    x = jnp.transpose(x_nchw, (0, 2, 3, 1))
    dn = lax.conv_dimension_numbers(x.shape, w1.shape, ('NHWC', 'HWIO', 'NHWC'))
    y = lax.conv_general_dilated(x, w1, (1, 1), ((1, 1), (1, 1)),
                                 dimension_numbers=dn)
    y = jnp.maximum(y * s1 + b1, 0.0)
    y = lax.conv_general_dilated(y, w2, (1, 1), ((1, 1), (1, 1)),
                                 dimension_numbers=dn)
    y = y * s2 + b2 + x            # NOTE: this module has no post-residual ReLU
    return jnp.transpose(y, (0, 3, 1, 2))


if __name__ == "__main__":
    key = jax.random.PRNGKey(0)
    # stride=1, downsample=None => Cin == Cout; W*C = 128 gives lane-dense matmuls.
    N, C, H, W = 2, 8, 16, 16
    keys = jax.random.split(key, 11)

    x = jax.random.normal(keys[0], (N, C, H, W), jnp.float32)

    # Conv weights in HWIO layout (PyTorch OIHW transposed), no bias.
    w1 = jax.random.normal(keys[1], (3, 3, C, C), jnp.float32) * 0.1
    w2 = jax.random.normal(keys[2], (3, 3, C, C), jnp.float32) * 0.1

    # BatchNorm parameters (eval mode), folded to per-channel scale/bias.
    g1 = 1.0 + 0.1 * jax.random.normal(keys[3], (C,), jnp.float32)
    be1 = 0.1 * jax.random.normal(keys[4], (C,), jnp.float32)
    m1 = 0.1 * jax.random.normal(keys[5], (C,), jnp.float32)
    v1 = 0.5 + jax.random.uniform(keys[6], (C,), jnp.float32)
    g2 = 1.0 + 0.1 * jax.random.normal(keys[7], (C,), jnp.float32)
    be2 = 0.1 * jax.random.normal(keys[8], (C,), jnp.float32)
    m2 = 0.1 * jax.random.normal(keys[9], (C,), jnp.float32)
    v2 = 0.5 + jax.random.uniform(keys[10], (C,), jnp.float32)

    s1, b1 = fold_bn(g1, be1, m1, v1)
    s2, b2 = fold_bn(g2, be2, m2, v2)

    out = basic_block(x, w1, s1, b1, w2, s2, b2)
    out = jax.block_until_ready(out)

    ref = reference_basic_block(x, w1, s1, b1, w2, s2, b2)
    assert out.shape == (N, C, H, W)
    # Tolerance accounts for bf16 matmul operands (f32 accumulation, f32 epilogue).
    assert jnp.allclose(out, ref, atol=3e-2, rtol=3e-2), "mismatch vs reference"

    print("KERNEL_OK")
</pallas_src>

<mosaic_0001>
module attributes {stable_mosaic.version = 11 : i64} {
  func.func @basic_block_kernel(%arg0: i32, %arg1: memref<1x16x128xf32, #tpu.memory_space<vmem>>, %arg2: memref<3x128x128xbf16, #tpu.memory_space<vmem>>, %arg3: memref<1x128xf32, #tpu.memory_space<vmem>>, %arg4: memref<1x128xf32, #tpu.memory_space<vmem>>, %arg5: memref<3x128x128xbf16, #tpu.memory_space<vmem>>, %arg6: memref<1x128xf32, #tpu.memory_space<vmem>>, %arg7: memref<1x128xf32, #tpu.memory_space<vmem>>, %arg8: memref<1x16x128xf32, #tpu.memory_space<vmem>>) attributes {dimension_semantics = [#tpu.dimension_semantics<parallel>], iteration_bounds = array<i64: 2>, scalar_prefetch = 0 : i64, scratch_operands = 0 : i64, tpu.core_type = #tpu.core_type<tc>, window_params = [{transform_indices = @transform_0, window_bounds = array<i64: 1, 16, 128>}, {pipeline_mode = #tpu.pipeline_mode<synchronous>, transform_indices = @transform_1, window_bounds = array<i64: 3, 128, 128>}, {pipeline_mode = #tpu.pipeline_mode<synchronous>, transform_indices = @transform_2, window_bounds = array<i64: 1, 128>}, {pipeline_mode = #tpu.pipeline_mode<synchronous>, transform_indices = @transform_3, window_bounds = array<i64: 1, 128>}, {pipeline_mode = #tpu.pipeline_mode<synchronous>, transform_indices = @transform_4, window_bounds = array<i64: 3, 128, 128>}, {pipeline_mode = #tpu.pipeline_mode<synchronous>, transform_indices = @transform_5, window_bounds = array<i64: 1, 128>}, {pipeline_mode = #tpu.pipeline_mode<synchronous>, transform_indices = @transform_6, window_bounds = array<i64: 1, 128>}, {transform_indices = @transform_7, window_bounds = array<i64: 1, 16, 128>}]} {
    %cst = arith.constant 0.000000e+00 : f32
    %0 = vector.broadcast %cst : f32 to vector<1x1x128xf32>
    %c0 = arith.constant 0 : index
    %c0_0 = arith.constant 0 : index
    %c0_1 = arith.constant 0 : index
    %1 = vector.load %arg1[%c0, %c0_0, %c0_1] : memref<1x16x128xf32, #tpu.memory_space<vmem>>, vector<1x16x128xf32>
    %2 = arith.truncf %1 : vector<1x16x128xf32> to vector<1x16x128xbf16>
    %3 = vector.shape_cast %2 : vector<1x16x128xbf16> to vector<16x128xbf16>
    %c0_2 = arith.constant 0 : index
    %c0_3 = arith.constant 0 : index
    %c0_4 = arith.constant 0 : index
    %4 = vector.load %arg2[%c0_2, %c0_3, %c0_4] : memref<3x128x128xbf16, #tpu.memory_space<vmem>>, vector<1x128x128xbf16>
    %5 = vector.shape_cast %4 : vector<1x128x128xbf16> to vector<128x128xbf16>
    %cst_5 = arith.constant dense<0.000000e+00> : vector<16x128xf32>
    %6 = tpu.matmul %3, %5, %cst_5 {dimension_numbers = #tpu.dot_dimension_numbers<[1], [0], [0], [1], [0, 0, 1, 1], [], []>} : vector<16x128xbf16>, vector<128x128xbf16>, vector<16x128xf32> -> vector<16x128xf32>
    %7 = vector.shape_cast %6 : vector<16x128xf32> to vector<1x16x128xf32>
    %c1 = arith.constant 1 : index
    %c0_6 = arith.constant 0 : index
    %c0_7 = arith.constant 0 : index
    %8 = vector.load %arg2[%c1, %c0_6, %c0_7] : memref<3x128x128xbf16, #tpu.memory_space<vmem>>, vector<1x128x128xbf16>
    %9 = vector.shape_cast %8 : vector<1x128x128xbf16> to vector<128x128xbf16>
    %cst_8 = arith.constant dense<0.000000e+00> : vector<16x128xf32>
    %10 = tpu.matmul %3, %9, %cst_8 {dimension_numbers = #tpu.dot_dimension_numbers<[1], [0], [0], [1], [0, 0, 1, 1], [], []>} : vector<16x128xbf16>, vector<128x128xbf16>, vector<16x128xf32> -> vector<16x128xf32>
    %11 = vector.shape_cast %10 : vector<16x128xf32> to vector<1x16x128xf32>
    %c2 = arith.constant 2 : index
    %c0_9 = arith.constant 0 : index
    %c0_10 = arith.constant 0 : index
    %12 = vector.load %arg2[%c2, %c0_9, %c0_10] : memref<3x128x128xbf16, #tpu.memory_space<vmem>>, vector<1x128x128xbf16>
    %13 = vector.shape_cast %12 : vector<1x128x128xbf16> to vector<128x128xbf16>
    %cst_11 = arith.constant dense<0.000000e+00> : vector<16x128xf32>
    %14 = tpu.matmul %3, %13, %cst_11 {dimension_numbers = #tpu.dot_dimension_numbers<[1], [0], [0], [1], [0, 0, 1, 1], [], []>} : vector<16x128xbf16>, vector<128x128xbf16>, vector<16x128xf32> -> vector<16x128xf32>
    %15 = vector.shape_cast %14 : vector<16x128xf32> to vector<1x16x128xf32>
    %16 = vector.extract_strided_slice %7 {offsets = [0, 0, 0], sizes = [1, 15, 128], strides = [1, 1, 1]} : vector<1x16x128xf32> to vector<1x15x128xf32>
    %17 = tpu.concatenate %0, %16 in 1 : vector<1x1x128xf32>, vector<1x15x128xf32> -> vector<1x16x128xf32>
    %18 = vector.extract_strided_slice %15 {offsets = [0, 1, 0], sizes = [1, 15, 128], strides = [1, 1, 1]} : vector<1x16x128xf32> to vector<1x15x128xf32>
    %19 = tpu.concatenate %18, %0 in 1 : vector<1x15x128xf32>, vector<1x1x128xf32> -> vector<1x16x128xf32>
    %20 = arith.addf %17, %11 : vector<1x16x128xf32>
    %21 = arith.addf %20, %19 : vector<1x16x128xf32>
    %c0_12 = arith.constant 0 : index
    %c0_13 = arith.constant 0 : index
    %22 = vector.load %arg3[%c0_12, %c0_13] : memref<1x128xf32, #tpu.memory_space<vmem>>, vector<1x128xf32>
    %23 = vector.shape_cast %22 : vector<1x128xf32> to vector<1x1x128xf32>
    %24 = vector.broadcast %23 : vector<1x1x128xf32> to vector<1x16x128xf32>
    %25 = arith.mulf %21, %24 : vector<1x16x128xf32>
    %c0_14 = arith.constant 0 : index
    %c0_15 = arith.constant 0 : index
    %26 = vector.load %arg4[%c0_14, %c0_15] : memref<1x128xf32, #tpu.memory_space<vmem>>, vector<1x128xf32>
    %27 = vector.shape_cast %26 : vector<1x128xf32> to vector<1x1x128xf32>
    %28 = vector.broadcast %27 : vector<1x1x128xf32> to vector<1x16x128xf32>
    %29 = arith.addf %25, %28 : vector<1x16x128xf32>
    %cst_16 = arith.constant 0.000000e+00 : f32
    %30 = vector.broadcast %cst_16 : f32 to vector<1x16x128xf32>
    %31 = arith.maximumf %29, %30 : vector<1x16x128xf32>
    %32 = arith.truncf %31 : vector<1x16x128xf32> to vector<1x16x128xbf16>
    %33 = vector.shape_cast %32 : vector<1x16x128xbf16> to vector<16x128xbf16>
    %c0_17 = arith.constant 0 : index
    %c0_18 = arith.constant 0 : index
    %c0_19 = arith.constant 0 : index
    %34 = vector.load %arg5[%c0_17, %c0_18, %c0_19] : memref<3x128x128xbf16, #tpu.memory_space<vmem>>, vector<1x128x128xbf16>
    %35 = vector.shape_cast %34 : vector<1x128x128xbf16> to vector<128x128xbf16>
    %cst_20 = arith.constant dense<0.000000e+00> : vector<16x128xf32>
    %36 = tpu.matmul %33, %35, %cst_20 {dimension_numbers = #tpu.dot_dimension_numbers<[1], [0], [0], [1], [0, 0, 1, 1], [], []>} : vector<16x128xbf16>, vector<128x128xbf16>, vector<16x128xf32> -> vector<16x128xf32>
    %37 = vector.shape_cast %36 : vector<16x128xf32> to vector<1x16x128xf32>
    %c1_21 = arith.constant 1 : index
    %c0_22 = arith.constant 0 : index
    %c0_23 = arith.constant 0 : index
    %38 = vector.load %arg5[%c1_21, %c0_22, %c0_23] : memref<3x128x128xbf16, #tpu.memory_space<vmem>>, vector<1x128x128xbf16>
    %39 = vector.shape_cast %38 : vector<1x128x128xbf16> to vector<128x128xbf16>
    %cst_24 = arith.constant dense<0.000000e+00> : vector<16x128xf32>
    %40 = tpu.matmul %33, %39, %cst_24 {dimension_numbers = #tpu.dot_dimension_numbers<[1], [0], [0], [1], [0, 0, 1, 1], [], []>} : vector<16x128xbf16>, vector<128x128xbf16>, vector<16x128xf32> -> vector<16x128xf32>
    %41 = vector.shape_cast %40 : vector<16x128xf32> to vector<1x16x128xf32>
    %c2_25 = arith.constant 2 : index
    %c0_26 = arith.constant 0 : index
    %c0_27 = arith.constant 0 : index
    %42 = vector.load %arg5[%c2_25, %c0_26, %c0_27] : memref<3x128x128xbf16, #tpu.memory_space<vmem>>, vector<1x128x128xbf16>
    %43 = vector.shape_cast %42 : vector<1x128x128xbf16> to vector<128x128xbf16>
    %cst_28 = arith.constant dense<0.000000e+00> : vector<16x128xf32>
    %44 = tpu.matmul %33, %43, %cst_28 {dimension_numbers = #tpu.dot_dimension_numbers<[1], [0], [0], [1], [0, 0, 1, 1], [], []>} : vector<16x128xbf16>, vector<128x128xbf16>, vector<16x128xf32> -> vector<16x128xf32>
    %45 = vector.shape_cast %44 : vector<16x128xf32> to vector<1x16x128xf32>
    %46 = vector.extract_strided_slice %37 {offsets = [0, 0, 0], sizes = [1, 15, 128], strides = [1, 1, 1]} : vector<1x16x128xf32> to vector<1x15x128xf32>
    %47 = tpu.concatenate %0, %46 in 1 : vector<1x1x128xf32>, vector<1x15x128xf32> -> vector<1x16x128xf32>
    %48 = vector.extract_strided_slice %45 {offsets = [0, 1, 0], sizes = [1, 15, 128], strides = [1, 1, 1]} : vector<1x16x128xf32> to vector<1x15x128xf32>
    %49 = tpu.concatenate %48, %0 in 1 : vector<1x15x128xf32>, vector<1x1x128xf32> -> vector<1x16x128xf32>
    %50 = arith.addf %47, %41 : vector<1x16x128xf32>
    %51 = arith.addf %50, %49 : vector<1x16x128xf32>
    %c0_29 = arith.constant 0 : index
    %c0_30 = arith.constant 0 : index
    %52 = vector.load %arg6[%c0_29, %c0_30] : memref<1x128xf32, #tpu.memory_space<vmem>>, vector<1x128xf32>
    %53 = vector.shape_cast %52 : vector<1x128xf32> to vector<1x1x128xf32>
    %54 = vector.broadcast %53 : vector<1x1x128xf32> to vector<1x16x128xf32>
    %55 = arith.mulf %51, %54 : vector<1x16x128xf32>
    %c0_31 = arith.constant 0 : index
    %c0_32 = arith.constant 0 : index
    %56 = vector.load %arg7[%c0_31, %c0_32] : memref<1x128xf32, #tpu.memory_space<vmem>>, vector<1x128xf32>
    %57 = vector.shape_cast %56 : vector<1x128xf32> to vector<1x1x128xf32>
    %58 = vector.broadcast %57 : vector<1x1x128xf32> to vector<1x16x128xf32>
    %59 = arith.addf %55, %58 : vector<1x16x128xf32>
    %60 = arith.addf %59, %1 : vector<1x16x128xf32>
    %c0_33 = arith.constant 0 : index
    %c0_34 = arith.constant 0 : index
    %c0_35 = arith.constant 0 : index
    %61 = vector.load %arg8[%c0_33, %c0_34, %c0_35] : memref<1x16x128xf32, #tpu.memory_space<vmem>>, vector<1x16x128xf32>
    tpu.vector_store %arg8[%c0_33, %c0_34, %c0_35], %60 {strides = array<i32>} : memref<1x16x128xf32, #tpu.memory_space<vmem>>, vector<1x16x128xf32>,
    return
  }
  func.func @transform_0(%arg0: i32) -> (i32, i32, i32) {
    %c0_i32 = arith.constant 0 : i32
    %c0_i32_0 = arith.constant 0 : i32
    %c0_i32_1 = arith.constant 0 : i32
    return %arg0, %c0_i32, %c0_i32_0 : i32, i32, i32
  }
  func.func @transform_1(%arg0: i32) -> (i32, i32, i32) {
    %c0_i32 = arith.constant 0 : i32
    %c0_i32_0 = arith.constant 0 : i32
    %c0_i32_1 = arith.constant 0 : i32
    %c0_i32_2 = arith.constant 0 : i32
    return %c0_i32, %c0_i32_0, %c0_i32_1 : i32, i32, i32
  }
  func.func @transform_2(%arg0: i32) -> (i32, i32) {
    %c0_i32 = arith.constant 0 : i32
    %c0_i32_0 = arith.constant 0 : i32
    %c0_i32_1 = arith.constant 0 : i32
    return %c0_i32, %c0_i32_0 : i32, i32
  }
  func.func @transform_3(%arg0: i32) -> (i32, i32) {
    %c0_i32 = arith.constant 0 : i32
    %c0_i32_0 = arith.constant 0 : i32
    %c0_i32_1 = arith.constant 0 : i32
    return %c0_i32, %c0_i32_0 : i32, i32
  }
  func.func @transform_4(%arg0: i32) -> (i32, i32, i32) {
    %c0_i32 = arith.constant 0 : i32
    %c0_i32_0 = arith.constant 0 : i32
    %c0_i32_1 = arith.constant 0 : i32
    %c0_i32_2 = arith.constant 0 : i32
    return %c0_i32, %c0_i32_0, %c0_i32_1 : i32, i32, i32
  }
  func.func @transform_5(%arg0: i32) -> (i32, i32) {
    %c0_i32 = arith.constant 0 : i32
    %c0_i32_0 = arith.constant 0 : i32
    %c0_i32_1 = arith.constant 0 : i32
    return %c0_i32, %c0_i32_0 : i32, i32
  }
  func.func @transform_6(%arg0: i32) -> (i32, i32) {
    %c0_i32 = arith.constant 0 : i32
    %c0_i32_0 = arith.constant 0 : i32
    %c0_i32_1 = arith.constant 0 : i32
    return %c0_i32, %c0_i32_0 : i32, i32
  }
  func.func @transform_7(%arg0: i32) -> (i32, i32, i32) {
    %c0_i32 = arith.constant 0 : i32
    %c0_i32_0 = arith.constant 0 : i32
    %c0_i32_1 = arith.constant 0 : i32
    return %arg0, %c0_i32, %c0_i32_0 : i32, i32, i32
  }
}

</mosaic_0001>

<bundles_post_ra>
// kernel: tpu_custom_call.1
= control target key start
LH: loop header
LB: loop body
LE: loop exit
PB: predicated region body
PF: predicated region fallthrough
CT: control target
= control target key end

     0   :  { %s2010_s0 = inlined_call_operand.hbm [shape: f32[2,16,128], index: 0, kind: input, shape index: {}]   ;;  %s2011_s1 = inlined_call_operand.hbm [shape: bf16[3,128,128], index: 1, kind: input, shape index: {}]   ;;  %s2012_s2 = inlined_call_operand.vmem [shape: f32[1,128], index: 2, kind: input, shape index: {}]   ;;  %s2013_s3 = inlined_call_operand.vmem [shape: f32[1,128], index: 3, kind: input, shape index: {}]   ;;  %s2014_s4 = inlined_call_operand.hbm [shape: bf16[3,128,128], index: 4, kind: input, shape index: {}]   ;;  %s2015_s5 = inlined_call_operand.vmem [shape: f32[1,128], index: 5, kind: input, shape index: {}]   ;;  %s2016_s6 = inlined_call_operand.vmem [shape: f32[1,128], index: 6, kind: input, shape index: {}]   ;;  %s2017_s7 = inlined_call_operand.hbm [shape: f32[2,16,128], index: 7, kind: output, shape index: {}]  }
   0x1   :  { %2022 = sst [smem:[#allocation12_spill]] %s2011_s1 }
   0x2   :  { %12 = vsyncpa [#allocation3], 0 }
   0x3   :  { %14 = vsyncpa [#allocation3 + $0x1], 0 }
   0x4   :  { %15 = vsyncpa [#allocation6], 0 }
   0x5   :  { %16 = vsyncpa [#allocation4], 0 }
   0x6   :  { %18 = vsyncpa [#allocation4 + $0x1], 0  ;;  %s1726_s24 = smov 0   ;;  %s1728_s25 = smov 0  }
   0x7   :  { %s1730_s26 = smov 0   ;;  %s1732_s27 = smov 0  }
   0x8 LB: > { %s1747_s28 = sadd.s32 4294967295, %s1672_s27   ;;  %s1155_s29 = sadd.s32 4294967294, %s1672_s27   ;;  %s1672_s27 = sphi %s1732_s27, %s2041_s27   ;;  %s1668_s26 = sphi %s1730_s26, %s2040_s26   ;;  %s1664_s25 = sphi %s1728_s25, %s2039_s25   ;;  %s1660_s24 = sphi %s1726_s24, %s2038_s24  }
   0x9   : > { %p44_p0 = scmp.ne.s32.totalorder %s1664_s25, %s1660_s24  ;;  %p2018_p1 = scmp.eq.s32.totalorder %s1747_s28, 0 }
   0xa   : > { %p200_p3 = scmp.eq.s32.totalorder %s1155_s29, 1  ;;  %p1156_p5 = scmp.ge.s32.totalorder %s1672_s27, 1 }
   0xb   : > { %p1756_p4 = por %p2018_p1, %p44_p0  ;;  %p207_p7 = scmp.lt.s32.totalorder %s1672_s27, 3 }
   0xc   : > { %p1761_p6 = por %p200_p3, %p44_p0  ;;  %s1674_s10 = smov [#allocation5]  }
   0xd   : > { %s2023_s30 = scalar_select %p1756_p4, 1, 0 }
   0xe   : > { %s2024_s8 = scalar_select %p1761_p6, 1, 0 }
   0xf   : > { %p1766_p8 = pnand %p1156_p5, %p207_p7  ;;  %s219_s11 = sshll.u32 %s1674_s10, 4  ;;  %s220_s11 = int_to_ptr.vmem [resolvable:$true] %s219_s11 }
  0x10   : > { %s1675_s13 = smov [#allocation7]   ;;  %s1535_s15 = scalar_lea.vmem %s220_s11, 3072 }
  0x11   : > { %s2025_s9 = scalar_select %p1766_p8, 1, 0 }
  0x12   : > { %p1413_p9 = pneg %p1766_p8  ;;  %s238_s14 = sshll.u32 %s1675_s13, 4  ;;  %s239_s14 = int_to_ptr.vmem [resolvable:$true] %s238_s14 }
  0x13   : > { %p1536_p13 = scmp.ne.s32.totalorder %s220_s11, %s1535_s15  ;;  %p1543_p5 = scmp.lt.s32.totalorder %s220_s11, %s220_s11 }
  0x14   : > { %p1775_p11 = pnand %p1413_p9, %p2018_p1  ;;  %p1544_p7 = scmp.lt.s32.totalorder %s1535_s15, %s1535_s15 }
  0x16   : > { %p1526_p12 = pneg %p1775_p11  ;;  %p1545_p10 = por %p1544_p7, %p1543_p5 }
  0x18   : > { %p1538_p0 = pnand %p1536_p13, %p1526_p12 }
  0x1a   : > { %p1539_p3 = pneg %p1538_p0 }
  0x1c   : > { %p1546_p9 = pnand %p1545_p10, %p1539_p3 }
  0x1e   : > { %1549 = shalt.err (!%p1546_p9)
}
  0x1f   : > { %s1676_s16 = smov 64   ;;  %s1677_s17 = smov 4  }
  0x20   : > { %s2027_s1 = sld [smem:[#allocation12_spill]]  ;;  %s1561_s20 = scalar_lea.vmem %s239_s14, 3072 }
  0x21   : > { %p1562_p1 = scmp.ne.s32.totalorder %s239_s14, %s1561_s20  ;;  %p1569_p2 = scmp.lt.s32.totalorder %s239_s14, %s239_s14 }
  0x22   : > { %p1570_p6 = scmp.lt.s32.totalorder %s1561_s20, %s1561_s20 }
  0x23   : > { %p1564_p13 = pnand %p1562_p1, %p1526_p12 }
  0x24   : > { %p1571_p5 = por %p1570_p6, %p1569_p2 }
  0x25   : > { %p1565_p0 = pneg %p1564_p13 }
  0x26   : > { %1416 = dma.hbm_to_vmem [thread:$0]  (!%p1775_p11), %s2027_s1, 3072, %s220_s11, [#allocation6], %s1676_s16, %s1676_s16, %s1677_s17  }
  0x27   : > { %p1572_p10 = pnand %p1571_p5, %p1565_p0 }
  0x29   : > { %1575 = shalt.err (!%p1572_p10)
}
  0x2a   : > { %1419 = dma.hbm_to_vmem [thread:$0]  (!%p1775_p11), %s2014_s4, 3072, %s239_s14, [#allocation6], %s1676_s16, %s1676_s16, %s1677_s17  }
  0x2b   : > { %s1798_s23 = sadd.s32 1, %s1672_s27   ;;  %s31_s29 = sadd.s32 1, %s1668_s26 }
  0x2c   : > { %s28_s10 = ssub.s32 %s1672_s27, %s1798_s23  ;;  %p38_p1 = scmp.ne.s32.totalorder %s1668_s26, %s1664_s25 }
  0x2d   : > { %p29_p2 = scmp.eq.s32.totalorder %s28_s10, 0  ;;  %p39_p6 = scmp.eq.s32.totalorder %s1672_s27, 0 }
  0x2e   : > { %p2028_p12 = scmp.eq.s32.totalorder %s1747_s28, 1  ;;  %p1430_p7 = scmp.lt.s32.totalorder %s1672_s27, 2 }
  0x2f   : > { %s1814_s12 = scalar_select %p29_p2, %s1668_s26, %s31_s29  }
  0x30   : > { %p1808_p3 = por %p2028_p12, %p38_p1  ;;  %p40_p9 = por %p39_p6, %p38_p1 }
  0x31   : > { %s258_s13 = sand.u32 1, %s1668_s26   ;;  %s1225_s14 = sshll.u32 %s1672_s27, 8 }
  0x32   : > { %s2029_s11 = scalar_select %p1808_p3, 1, 0 }
  0x33   : > { %s1160_s15 = sshll.u32 %s258_s13, 4  ;;  %s1821_s18 = scalar_lea.hbm %s2010_s0, %s1225_s14 }
  0x34   : > { %s262_s19 = scalar_lea.vmem [#allocation2], %s1160_s15  ;;  %p1825_p11 = pnand %p1430_p7, %p40_p9 }
  0x35   : > { %s269_s20 = sshll.u32 %s262_s19, 4  ;;  %s1829_s22 = scalar_lea.sflag [#allocation3], %s258_s13  ;;  %s1823_s20 = int_to_ptr.vmem [resolvable:$true] %s269_s20 }
  0x36   : > { %s1576_s29 = scalar_lea.hbm %s1821_s18, 256  ;;  %p1578_p0 = pneg %p1825_p11 }
  0x37   : > { %p1577_p13 = scmp.ne.s32.totalorder %s1821_s18, %s1576_s29  ;;  %s1581_s15 = scalar_lea.hbm %s2010_s0, 512 }
  0x38   : > { %p1582_p1 = scmp.lt.s32.totalorder %s1821_s18, %s2010_s0  ;;  %p1583_p2 = scmp.lt.s32.totalorder %s1581_s15, %s1576_s29 }
  0x39   : > { %p1579_p5 = pnand %p1578_p0, %p1577_p13 }
  0x3a   : > { %p1584_p6 = por %p1583_p2, %p1582_p1 }
  0x3b   : > { %p1580_p10 = pneg %p1579_p5 }
  0x3d   : > { %p1585_p12 = pnand %p1584_p6, %p1580_p10 }
  0x3f   : > { %1588 = shalt.err (!%p1585_p12)
}
  0x40   : > { %s1589_s13 = scalar_lea.vmem %s1823_s20, 256  ;;  %s1678_s19 = smov [#allocation2]  }
  0x41   : > { %p1590_p7 = scmp.ne.s32.totalorder %s1823_s20, %s1589_s13  ;;  %s1594_s1 = sshll.u32 %s1678_s19, 4  ;;  %s1595_s1 = int_to_ptr.vmem [resolvable:$false] %s1594_s1 }
  0x42   : > { %s1596_s10 = scalar_lea.vmem %s1595_s1, 512  ;;  %p1597_p5 = scmp.lt.s32.totalorder %s1823_s20, %s1595_s1 }
  0x43   : > { %p1592_p9 = pnand %p1590_p7, %p1578_p0  ;;  %p1598_p3 = scmp.lt.s32.totalorder %s1596_s10, %s1589_s13 }
  0x45   : > { %p1593_p13 = pneg %p1592_p9  ;;  %p1599_p4 = por %p1598_p3, %p1597_p5 }
  0x47   : > { %p1600_p8 = pnand %p1599_p4, %p1593_p13 }
  0x49   : > { %1603 = shalt.err (!%p1600_p8)
}
  0x4a   : > { %s1679_s29 = smov 128   ;;  %s1680_s14 = smov 8  }
  0x4b   : > { %1423 = dma.hbm_to_vmem [thread:$0]  (!%p1825_p11), %s1821_s18, 256, %s1823_s20, %s1829_s22, %s1679_s29, %s1679_s29, %s1680_s14  }
  0x4c   : > { %p2031_p0 = scmp.ne.s32.totalorder %s2025_s9, 0 }
  0x4d   : > { %s1853_s15 = sand.u32 (!%p2031_p0), 1, %s1664_s25   ;;  %p2032_p4 = scmp.ne.s32.totalorder (!%p2031_p0), %s2023_s30, 0 }
  0x4e   : > { %281 = sbr.rel (%p2031_p0) target bundleno = 617 (0x269), region = 48  ;;  %s1164_s1 = sshll.u32 (!%p2031_p0), %s1853_s15, 4 }
  0x4f   : > { %s284_s16 = scalar_lea.sflag (!%p2031_p0), [#allocation3], %s1853_s15  ;;  %s1859_s17 = scalar_lea.vmem (!%p2031_p0), [#allocation2], %s1164_s1 }
  0x53   : > { %1647 = dma.done.wait (%p2032_p4), %s284_s16, 256  }
  0x54   : > { %1649 = vsyncadd (%p2032_p4), %s284_s16, 4294967040  ;;  %p2033_p8 = scmp.eq.s32.totalorder %s1747_s28, 0 }
  0x56   : > { %1651 = dma.done.wait (%p2033_p8), [#allocation6], 6144   ;;  %p2034_p3 = pmov %p2033_p8 }
  0x57   : > { %v1681_v0 = vmov 0.0   ;;  %vm1682_vm0 = vmmov 0   ;;  %v1476_v1 = vld [vmem:[#allocation5 + $0x38] sm:$0xff]   ;;  %v1478_v3 = vld [vmem:[#allocation5 + $0x30] sm:$0xff]   ;;  %v1480_v5 = vld [vmem:[#allocation5 + $0x28] sm:$0xff]   ;;  %vm649_vm1 = vcmask 1040384  }
  0x58   : > { %1653 = vsyncadd (%p2034_p3), [#allocation6], 4294961152  ;;  %1281 = vmatprep.subr.bf16.mxu0 %v1681_v0  ;;  %1301 = vmatprep.subr.bf16.mxu1 %v1681_v0  ;;  %v1477_v2 = vld [vmem:[#allocation5 + $0x78] sm:$0xff]   ;;  %v1479_v4 = vld [vmem:[#allocation5 + $0x70] sm:$0xff]   ;;  %vm658_vm2 = vcmask 1046528   ;;  %s1226_s10 = sshll.u32 %s1747_s28, 8 }
  0x59   : > { %1297 = vmatprep.mubr.msk.bf16.mxu0 %vm1682_vm0, %v1681_v0  ;;  %1317 = vmatprep.mubr.msk.bf16.mxu1 %vm1682_vm0, %v1681_v0  ;;  %v1481_v6 = vld [vmem:[#allocation5 + $0x68] sm:$0xff]   ;;  %v1482_v7 = vld [vmem:[#allocation5 + $0x20] sm:$0xff]   ;;  %v1484_v9 = vld [vmem:[#allocation5 + $0x18] sm:$0xff]   ;;  %s325_s29 = scalar_lea.vmem [#allocation8], %s1164_s1  ;;  %s1963_s30 = scalar_lea.hbm %s2017_s7, %s1226_s10 }
  0x5a   : > { %1282 = vmatpush3.bf16.msra.mxu0 %v1476_v1  ;;  %1302 = vmatpush3.bf16.msra.mxu1 %v1477_v2  ;;  %v1483_v8 = vld [vmem:[#allocation5 + $0x60] sm:$0xff]   ;;  %v1485_v10 = vld [vmem:[#allocation5 + $0x58] sm:$0xff]   ;;  %v1486_v11 = vld [vmem:[#allocation5 + $0x10] sm:$0xff]   ;;  %s1063_s14 = sshll.u32 %s325_s29, 4  ;;  %s1050_s28 = scalar_lea.sflag [#allocation4], %s1853_s15  ;;  %s1965_s14 = int_to_ptr.vmem [resolvable:$true] %s1063_s14 }
  0x5b   : > { %1283 = vmatprep.subr.bf16.mxu0 %v1681_v0  ;;  %1303 = vmatprep.subr.bf16.mxu1 %v1681_v0  ;;  %v1487_v12 = vld [vmem:[#allocation5 + $0x50] sm:$0xff]   ;;  %v1488_v13 = vld [vmem:[#allocation5 + $0x8] sm:$0xff]   ;;  %v1490_v15 = vld [vmem:[#allocation5] sm:$0xff]   ;;  %s1604_s1 = scalar_lea.vmem %s1965_s14, 256  ;;  %p2035_p10 = scmp.ne.s32.totalorder %s2029_s11, 0 }
  0x5c   : > { %v1489_v14 = vld [vmem:[#allocation5 + $0x48] sm:$0xff]   ;;  %v1888_v16 = vld [vmem:[%s1859_s17] sm:$0xff]  ;;  %v1492_v19 = vld [vmem:[#allocation5 + $0xb8] sm:$0xff]   ;;  %p1605_p11 = scmp.ne.s32.totalorder %s1965_s14, %s1604_s1  ;;  %s1683_s9 = smov [#allocation8]  }
  0x5d   : > { %v1891_v17 = vld [vmem:[%s1859_s17 + $0x8] sm:$0xff]  ;;  %v1491_v18 = vld [vmem:[#allocation5 + $0x40] sm:$0xff]   ;;  %v1493_v21 = vld [vmem:[#allocation5 + $0xb0] sm:$0xff]   ;;  %s1608_s18 = sshll.u32 %s1683_s9, 4  ;;  %s1609_s18 = int_to_ptr.vmem [resolvable:$false] %s1608_s18 }
  0x5e   : > { %1284 = vmatpush3.bf16.msra.mxu0 %v1478_v3  ;;  %1304 = vmatpush3.bf16.msra.mxu1 %v1479_v4  ;;  %v329_v20 = vpack.c.bf16 %v1891_v17, %v1888_v16  ;;  %v1494_v22 = vld [vmem:[#allocation5 + $0xa8] sm:$0xff]   ;;  %v1495_v23 = vld [vmem:[#allocation5 + $0xa0] sm:$0xff]   ;;  %v1496_v24 = vld [vmem:[#allocation5 + $0x98] sm:$0xff]   ;;  %p1606_p1 = pnand %p1605_p11, %p2035_p10  ;;  %s1610_s20 = scalar_lea.vmem %s1609_s18, 512 }
  0x5f   : > { %1285 = vmatprep.subr.bf16.mxu0 %v1681_v0  ;;  %1305 = vmatprep.subr.bf16.mxu1 %v1681_v0  ;;  %v1497_v25 = vld [vmem:[#allocation5 + $0x90] sm:$0xff]   ;;  %v1498_v26 = vld [vmem:[#allocation5 + $0x88] sm:$0xff]   ;;  %v1499_v27 = vld [vmem:[#allocation5 + $0x80] sm:$0xff]   ;;  %p1611_p6 = scmp.lt.s32.totalorder %s1965_s14, %s1609_s18  ;;  %p1612_p12 = scmp.lt.s32.totalorder %s1610_s20, %s1604_s1 }
  0x60   : > { %v1500_v28 = vld [vmem:[#allocation7 + $0x38] sm:$0xff]   ;;  %v1502_v30 = vld [vmem:[#allocation7 + $0x30] sm:$0xff]   ;;  %v1504_v32 = vld [vmem:[#allocation7 + $0x28] sm:$0xff]   ;;  %p1607_p2 = pneg %p1606_p1 }
  0x61   : > { %v1501_v29 = vld [vmem:[#allocation7 + $0x78] sm:$0xff]   ;;  %v1503_v31 = vld [vmem:[#allocation7 + $0x70] sm:$0xff]   ;;  %v1505_v33 = vld [vmem:[#allocation7 + $0x68] sm:$0xff]   ;;  %p1613_p7 = por %p1612_p12, %p1611_p6 }
  0x62   : > { %1286 = vmatpush3.bf16.msra.mxu0 %v1480_v5  ;;  %1306 = vmatpush3.bf16.msra.mxu1 %v1481_v6  ;;  %v1506_v34 = vld [vmem:[#allocation7 + $0x20] sm:$0xff]   ;;  %v1508_v36 = vld [vmem:[#allocation7 + $0x18] sm:$0xff]   ;;  %v1510_v38 = vld [vmem:[#allocation7 + $0x10] sm:$0xff]  }
  0x63   : > { %1287 = vmatprep.subr.bf16.mxu0 %v1681_v0  ;;  %1307 = vmatprep.subr.bf16.mxu1 %v1681_v0  ;;  %v1507_v35 = vld [vmem:[#allocation7 + $0x60] sm:$0xff]   ;;  %v1509_v37 = vld [vmem:[#allocation7 + $0x58] sm:$0xff]   ;;  %v1511_v39 = vld [vmem:[#allocation7 + $0x50] sm:$0xff]   ;;  %p1614_p9 = pnand %p1613_p7, %p1607_p2 }
  0x64   : > { %v1512_v40 = vld [vmem:[#allocation7 + $0x8] sm:$0xff]   ;;  %v1514_v42 = vld [vmem:[#allocation7] sm:$0xff]  }
  0x65   : > { %v1513_v41 = vld [vmem:[#allocation7 + $0x48] sm:$0xff]   ;;  %v1515_v43 = vld [vmem:[#allocation7 + $0x40] sm:$0xff]  }
  0x66   : > { %1288 = vmatpush3.bf16.msra.mxu0 %v1482_v7  ;;  %1308 = vmatpush3.bf16.msra.mxu1 %v1483_v8  ;;  %v1192_v3 = vld [vmem:[%s2012_s2] ss:$0 sm:$0xff] }
  0x67   : > { %1289 = vmatprep.subr.bf16.mxu0 %v1681_v0  ;;  %1309 = vmatprep.subr.bf16.mxu1 %v1681_v0  ;;  %v1193_v6 = vld [vmem:[%s2013_s3] ss:$0 sm:$0xff] }
  0x6a   : > { %1290 = vmatpush3.bf16.msra.mxu0 %v1484_v9  ;;  %1310 = vmatpush3.bf16.msra.mxu1 %v1485_v10 }
  0x6b   : > { %1291 = vmatprep.subr.bf16.mxu0 %v1681_v0  ;;  %1311 = vmatprep.subr.bf16.mxu1 %v1681_v0 }
  0x6e   : > { %1292 = vmatpush3.bf16.msra.mxu0 %v1486_v11  ;;  %1312 = vmatpush3.bf16.msra.mxu1 %v1487_v12 }
  0x6f   : > { %1293 = vmatprep.subr.bf16.mxu0 %v1681_v0  ;;  %1313 = vmatprep.subr.bf16.mxu1 %v1681_v0 }
  0x72   : > { %1294 = vmatpush3.bf16.msra.mxu0 %v1488_v13  ;;  %1314 = vmatpush3.bf16.msra.mxu1 %v1489_v14  ;;  %v1516_v13 = vld [vmem:[#allocation7 + $0xb8] sm:$0xff]  }
  0x73   : > { %1295 = vmatprep.subr.bf16.mxu0 %v1681_v0  ;;  %1315 = vmatprep.subr.bf16.mxu1 %v1681_v0 }
  0x76   : > { %1296 = vmatpush3.bf16.msra.mxu0 %v1490_v15  ;;  %1316 = vmatpush3.bf16.msra.mxu1 %v1491_v18  ;;  %v1517_v15 = vld [vmem:[#allocation7 + $0xb0] sm:$0xff]   ;;  %v1518_v18 = vld [vmem:[#allocation7 + $0xa8] sm:$0xff]  }
  0x77   : > { %1321 = vmatprep.subr.bf16.mxu0 %v1681_v0  ;;  %1341 = vmatprep.subr.bf16.mxu1 %v1681_v0 }
  0x79   : > { %1298 = vmatmul.mubr.bf16.vlgmr.msra.gmra.mxu0 %v329_v20  ;;  %1318 = vmatmul.mubr.bf16.vlgmr.msra.gmra.mxu1 %v329_v20 }
  0x7a   : > { %1322 = vmatpush3.bf16.msra.mxu0 %v1492_v19  ;;  %1337 = vmatprep.mubr.msk.bf16.mxu0 %vm1682_vm0, %v1681_v0  ;;  %v1519_v19 = vld [vmem:[#allocation7 + $0xa0] sm:$0xff]  }
  0x7b   : > { %1323 = vmatprep.subr.bf16.mxu0 %v1681_v0  ;;  %1357 = vmatprep.mubr.msk.bf16.mxu1 %vm1682_vm0, %v1681_v0 }
  0x7c   : > { %1342 = vmatpush3.bf16.msra.mxu1 %v1500_v28 }
  0x7d   : > { %1343 = vmatprep.subr.bf16.mxu1 %v1681_v0 }
  0x7e   : > { %1324 = vmatpush3.bf16.msra.mxu0 %v1493_v21  ;;  %v1521_v21 = vld [vmem:[#allocation7 + $0x90] sm:$0xff]  }
  0x7f   : > { %1325 = vmatprep.subr.bf16.mxu0 %v1681_v0 }
  0x80   : > { %1344 = vmatpush3.bf16.msra.mxu1 %v1502_v30 }
  0x81   : > { %1345 = vmatprep.subr.bf16.mxu1 %v1681_v0 }
  0x82   : > { %1326 = vmatpush3.bf16.msra.mxu0 %v1494_v22  ;;  %v1522_v22 = vld [vmem:[#allocation7 + $0x88] sm:$0xff]  }
  0x83   : > { %1327 = vmatprep.subr.bf16.mxu0 %v1681_v0 }
  0x84   : > { %1346 = vmatpush3.bf16.msra.mxu1 %v1504_v32 }
  0x85   : > { %1347 = vmatprep.subr.bf16.mxu1 %v1681_v0 }
  0x86   : > { %1328 = vmatpush3.bf16.msra.mxu0 %v1495_v23  ;;  %v1523_v23 = vld [vmem:[#allocation7 + $0x80] sm:$0xff]  }
  0x87   : > { %1329 = vmatprep.subr.bf16.mxu0 %v1681_v0 }
  0x88   : > { %1348 = vmatpush3.bf16.msra.mxu1 %v1506_v34 }
  0x89   : > { %1349 = vmatprep.subr.bf16.mxu1 %v1681_v0 }
  0x8a   : > { %1330 = vmatpush3.bf16.msra.mxu0 %v1496_v24 }
  0x8b   : > { %1331 = vmatprep.subr.bf16.mxu0 %v1681_v0 }
  0x8c   : > { %1350 = vmatpush3.bf16.msra.mxu1 %v1508_v36 }
  0x8d   : > { %1351 = vmatprep.subr.bf16.mxu1 %v1681_v0 }
  0x8e   : > { %1332 = vmatpush3.bf16.msra.mxu0 %v1497_v25 }
  0x8f   : > { %1333 = vmatprep.subr.bf16.mxu0 %v1681_v0 }
  0x90   : > { %1352 = vmatpush3.bf16.msra.mxu1 %v1510_v38 }
  0x91   : > { %1353 = vmatprep.subr.bf16.mxu1 %v1681_v0 }
  0x92   : > { %1334 = vmatpush3.bf16.msra.mxu0 %v1498_v26 }
  0x93   : > { %1335 = vmatprep.subr.bf16.mxu0 %v1681_v0 }
  0x94   : > { %1354 = vmatpush3.bf16.msra.mxu1 %v1512_v40 }
  0x95   : > { %1355 = vmatprep.subr.bf16.mxu1 %v1681_v0 }
  0x96   : > { %1336 = vmatpush3.bf16.msra.mxu0 %v1499_v27 }
  0x97   : > { %1361 = vmatprep.subr.bf16.mxu0 %v1681_v0 }
  0x98   : > { %1356 = vmatpush3.bf16.msra.mxu1 %v1514_v42 }
  0x99   : > { %1338 = vmatmul.mubr.bf16.vlgmr.msra.gmra.mxu0 %v329_v20  ;;  %1381 = vmatprep.subr.bf16.mxu1 %v1681_v0  ;;  %v1520_v20 = vld [vmem:[#allocation7 + $0x98] sm:$0xff]  }
  0x9a   : > { %1377 = vmatprep.mubr.msk.bf16.mxu0 %vm1682_vm0, %v1681_v0  ;;  %1362 = vmatpush3.bf16.msra.mxu0 %v1501_v29 }
  0x9b   : > { %1363 = vmatprep.subr.bf16.mxu0 %v1681_v0 }
  0x9e   : > { %1364 = vmatpush3.bf16.msra.mxu0 %v1503_v31 }
  0x9f   : > { %1365 = vmatprep.subr.bf16.mxu0 %v1681_v0 }
  0xa2   : > { %1366 = vmatpush3.bf16.msra.mxu0 %v1505_v33 }
  0xa3   : > { %1367 = vmatprep.subr.bf16.mxu0 %v1681_v0 }
  0xa6   : > { %1368 = vmatpush3.bf16.msra.mxu0 %v1507_v35 }
  0xa7   : > { %1369 = vmatprep.subr.bf16.mxu0 %v1681_v0 }
  0xaa   : > { %1370 = vmatpush3.bf16.msra.mxu0 %v1509_v37 }
  0xab   : > { %1371 = vmatprep.subr.bf16.mxu0 %v1681_v0 }
  0xae   : > { %1372 = vmatpush3.bf16.msra.mxu0 %v1511_v39 }
  0xaf   : > { %1373 = vmatprep.subr.bf16.mxu0 %v1681_v0 }
  0xb2   : > { %1374 = vmatpush3.bf16.msra.mxu0 %v1513_v41 }
  0xb3   : > { %1375 = vmatprep.subr.bf16.mxu0 %v1681_v0 }
  0xb6   : > { %1376 = vmatpush3.bf16.msra.mxu0 %v1515_v43 }
 0x139   : > { %v428_v44 = vpop.f32.mrf.mxu0  ;;  %v534_v45 = vpop.f32.mrf.mxu1 }
 0x13a   : > { %v650_v52 = vrot.slane %v428_v44, 7 }
 0x13b   : > { %v1299_v46 = vpop.f32.mrf.mxu0  ;;  %v1319_v47 = vpop.f32.mrf.mxu1 }
 0x13c   : > { %v655_v56 = vsel %vm649_vm1, 0.0, %v650_v52 }
 0x13d   : > { %v431_v48 = vpop.f32.mrf.mxu0  ;;  %v537_v49 = vpop.f32.mrf.mxu1  ;;  %v665_v61 = vadd.f32 %v655_v56, %v534_v45  ;;  %v1218_v45 = vld [vmem:[%s2015_s5] ss:$0 sm:$0xff] }
 0x13e   : > { %v651_v53 = vrot.slane %v431_v48, 7  ;;  %v1219_v48 = vld [vmem:[%s2016_s6] ss:$0 sm:$0xff] }
 0x13f   : > { %v1300_v50 = vpop.f32.mrf.mxu0  ;;  %v1320_v51 = vpop.f32.mrf.mxu1 }
 0x140   : > { %v652_v57 = vsel %vm649_vm1, %v650_v52, %v651_v53 }
 0x141   : > { %v666_v62 = vadd.f32 %v652_v57, %v537_v49 }
 0x159   : > { %v640_v54 = vpop.f32.mrf.mxu0 }
 0x15a   : > { %v659_v59 = vrot.slane %v640_v54, 1 }
 0x15b   : > { %v1339_v55 = vpop.f32.mrf.mxu0 }
 0x15d   : > { %v643_v58 = vpop.f32.mrf.mxu0 }
 0x15e   : > { %v660_v60 = vrot.slane %v643_v58, 1 }
 0x15f   : > { %v1340_v63 = vpop.f32.mrf.mxu0 }
 0x160   : > { %v661_v1 = vsel %vm658_vm2, %v659_v59, %v660_v60  ;;  %v664_v2 = vsel %vm658_vm2, %v660_v60, 0.0 }
 0x161   : > { %v667_v4 = vadd.f32 %v665_v61, %v661_v1  ;;  %v668_v5 = vadd.f32 %v666_v62, %v664_v2 }
 0x163   : > { %v676_v7 = vmul.f32 %v1192_v3, %v667_v4  ;;  %v677_v8 = vmul.f32 %v1192_v3, %v668_v5 }
 0x165   : > { %v685_v9 = vadd.f32 %v1193_v6, %v676_v7  ;;  %v686_v10 = vadd.f32 %v1193_v6, %v677_v8 }
 0x167   : > { %v688_v11 = vmax.f32 %v686_v10, 0.0  ;;  %v687_v12 = vmax.f32 %v685_v9, 0.0 }
 0x169   : > { %v689_v14 = vpack.c.bf16 %v688_v11, %v687_v12 }
 0x16b   : > { %1358 = vmatmul.mubr.bf16.vlgmr.msra.gmra.mxu1 %v689_v14  ;;  %1378 = vmatmul.mubr.bf16.vlgmr.msra.gmra.mxu0 %v689_v14 }
 0x16c   : > { %1382 = vmatpush3.bf16.msra.mxu1 %v1516_v13  ;;  %1397 = vmatprep.mubr.msk.bf16.mxu1 %vm1682_vm0, %v1681_v0 }
 0x16d   : > { %1383 = vmatprep.subr.bf16.mxu1 %v1681_v0 }
 0x170   : > { %1384 = vmatpush3.bf16.msra.mxu1 %v1517_v15 }
 0x171   : > { %1385 = vmatprep.subr.bf16.mxu1 %v1681_v0 }
 0x174   : > { %1386 = vmatpush3.bf16.msra.mxu1 %v1518_v18 }
 0x175   : > { %1387 = vmatprep.subr.bf16.mxu1 %v1681_v0 }
 0x178   : > { %1388 = vmatpush3.bf16.msra.mxu1 %v1519_v19 }
 0x179   : > { %1389 = vmatprep.subr.bf16.mxu1 %v1681_v0 }
 0x17c   : > { %1390 = vmatpush3.bf16.msra.mxu1 %v1520_v20 }
 0x17d   : > { %1391 = vmatprep.subr.bf16.mxu1 %v1681_v0 }
 0x180   : > { %1392 = vmatpush3.bf16.msra.mxu1 %v1521_v21 }
 0x181   : > { %1393 = vmatprep.subr.bf16.mxu1 %v1681_v0 }
 0x184   : > { %1394 = vmatpush3.bf16.msra.mxu1 %v1522_v22 }
 0x185   : > { %1395 = vmatprep.subr.bf16.mxu1 %v1681_v0 }
 0x188   : > { %1396 = vmatpush3.bf16.msra.mxu1 %v1523_v23 }
 0x18b   : > { %1398 = vmatmul.mubr.bf16.vlgmr.msra.gmra.mxu1 %v689_v14 }
 0x22b   : > { %v788_v24 = vpop.f32.mrf.mxu1  ;;  %v894_v25 = vpop.f32.mrf.mxu0 }
 0x22c   : > { %v1009_v32 = vrot.slane %v788_v24, 7 }
 0x22d   : > { %v1359_v26 = vpop.f32.mrf.mxu1  ;;  %v1379_v27 = vpop.f32.mrf.mxu0 }
 0x22e   : > { %v1014_v36 = vsel %vm649_vm1, 0.0, %v1009_v32 }
 0x22f   : > { %v791_v28 = vpop.f32.mrf.mxu1  ;;  %v897_v29 = vpop.f32.mrf.mxu0  ;;  %v1023_v40 = vadd.f32 %v1014_v36, %v894_v25 }
 0x230   : > { %v1010_v33 = vrot.slane %v791_v28, 7 }
 0x231   : > { %v1360_v30 = vpop.f32.mrf.mxu1  ;;  %v1380_v31 = vpop.f32.mrf.mxu0 }
 0x232   : > { %v1011_v37 = vsel %vm649_vm1, %v1009_v32, %v1010_v33 }
 0x233   : > { %v1024_v41 = vadd.f32 %v1011_v37, %v897_v29 }
 0x24b   : > { %v1000_v34 = vpop.f32.mrf.mxu1 }
 0x24c   : > { %v1017_v38 = vrot.slane %v1000_v34, 1 }
 0x24d   : > { %v1399_v35 = vpop.f32.mrf.mxu1 }
 0x24f   : > { %v1003_v0 = vpop.f32.mrf.mxu1 }
 0x250   : > { %v1018_v39 = vrot.slane %v1003_v0, 1 }
 0x251   : > { %v1400_v42 = vpop.f32.mrf.mxu1 }
 0x252   : > { %v1019_v43 = vsel %vm658_vm2, %v1017_v38, %v1018_v39  ;;  %v1022_v44 = vsel %vm658_vm2, %v1018_v39, 0.0 }
 0x253   : > { %v1025_v46 = vadd.f32 %v1023_v40, %v1019_v43  ;;  %v1026_v47 = vadd.f32 %v1024_v41, %v1022_v44 }
 0x255   : > { %v1034_v49 = vmul.f32 %v1218_v45, %v1025_v46  ;;  %v1035_v50 = vmul.f32 %v1218_v45, %v1026_v47 }
 0x257   : > { %v1043_v51 = vadd.f32 %v1219_v48, %v1034_v49  ;;  %v1044_v52 = vadd.f32 %v1219_v48, %v1035_v50 }
 0x259   : > { %v1045_v53 = vadd.f32 %v1043_v51, %v1888_v16  ;;  %v1046_v54 = vadd.f32 %v1044_v52, %v1891_v17 }
 0x25b   : > { %1048 = vst [vmem:[%s325_s29 + $0x8] sm:$0xff] %v1046_v54  ;;  %1047 = vst [vmem:[%s325_s29] sm:$0xff] %v1045_v53 }
 0x25c   : > { %1617 = shalt.err (!%p1614_p9)
}
 0x25d   : > { %s1618_s21 = scalar_lea.hbm %s1963_s30, 256  ;;  %s1622_s19 = scalar_lea.hbm %s2017_s7, 512 }
 0x25e   : > { %p1619_p13 = scmp.ne.s32.totalorder %s1963_s30, %s1618_s21  ;;  %p1623_p4 = scmp.lt.s32.totalorder %s1963_s30, %s2017_s7 }
 0x25f   : > { %p1624_p8 = scmp.lt.s32.totalorder %s1622_s19, %s1618_s21 }
 0x260   : > { %p1620_p5 = pnand %p1619_p13, %p2035_p10 }
 0x261   : > { %p1625_p3 = por %p1624_p8, %p1623_p4 }
 0x262   : > { %p1621_p0 = pneg %p1620_p5 }
 0x264   : > { %p1626_p11 = pnand %p1625_p3, %p1621_p0 }
 0x266   : > { %1629 = shalt.err (!%p1626_p11)
}
 0x267   : > { %s1684_s16 = smov 128   ;;  %s1685_s17 = smov 8  }
 0x268   : > { %1411 = dma.vmem_to_hbm [thread:$0]  (%p2035_p10), %s1965_s14, 256, %s1963_s30, %s1050_s28, %s1684_s16, %s1684_s16, %s1685_s17  }
 0x269 PF: > { %s1078_s1 = sand.u32 1, %s1660_s24   ;;  %p2036_p1 = scmp.ne.s32.totalorder %s2024_s8, 0 }
 0x26a   : > { %p2037_p2 = scmp.ge.s32.totalorder %s1672_s27, 2  ;;  %s1079_s9 = scalar_lea.sflag [#allocation4], %s1078_s1 }
 0x26c   : > { %p1425_p6 = pnand %p2037_p2, %p2036_p1 }
 0x26e   : > { %p1426_p12 = pneg %p1425_p6 }
 0x270   : > { %1655 = dma.done.wait (%p1426_p12), %s1079_s9, 256  }
 0x271   : > { %1657 = vsyncadd (%p1426_p12), %s1079_s9, 4294967040  ;;  %p21_p7 = scmp.ge.s32.totalorder %s1798_s23, 4   ;;  %s2038_s24 = smov %s1664_s25 }
 0x272   : > { %s2039_s25 = smov %s1668_s26  ;;  %s2040_s26 = smov %s1814_s12 }
 0x273   : > { %s2041_s27 = smov %s1798_s23  ;;  %23 = sbr.rel (!%p21_p7) target bundleno = 8 (0x8), region = 105 }
 0x278   :  { %1084 = vsyncpa [#allocation3], 1 }
 0x279   :  { %1086 = vsyncpa [#allocation3 + $0x1], 1 }
 0x27a   :  { %1087 = vsyncpa [#allocation6], 1 }
 0x27b   :  { %1088 = vsyncpa [#allocation4], 1 }
 0x27c   :  { %1090 = vsyncpa [#allocation4 + $0x1], 1 }

</bundles_post_ra>
